<compile_context>
chip_gen: v5e
topology: v5e:2x2
jax: 0.10.0
libtpu: 0.0.40
codegen_flags: <defaults>
</compile_context>

<pallas_src>
import functools

import jax
import jax.numpy as jnp
from jax.experimental import pallas as pl
from jax.experimental.pallas import tpu as pltpu


_VMEM_LIMIT_BYTES = 32 * 1024 * 1024     # safe scoped-VMEM request on v5e/v6e/v7x
_TILE_BYTES_BUDGET = 16 * 1024 * 1024    # double-buffered in+out footprint target
_MAX_TILE_B = 1024


def _round_up(x, m):
    return (x + m - 1) // m * m


def _log_softmax_f32(x):
    """Numerically stable log_softmax over the lane (last) axis."""
    m = jnp.max(x, axis=-1, keepdims=True)
    z = x - m
    lse = jnp.log(jnp.sum(jnp.exp(z), axis=-1, keepdims=True))
    return z - lse


def _mnll_partial_sum_kernel(x_ref, y_ref, out_ref):
    """One (tile_b, N_pad) row block -> one per-block partial sum."""
    x = x_ref[...].astype(jnp.float32)
    y = y_ref[...].astype(jnp.float32)
    log_sm = _log_softmax_f32(x)
    blk_sum = jnp.sum(-y * log_sm)
    # Lane/sublane-dense (1, 8, 128) block per grid step; wrapper reads [i, 0, 0].
    out_ref[...] = jnp.full(out_ref.shape, blk_sum, dtype=out_ref.dtype)


def _mnll_elementwise_kernel(x_ref, y_ref, out_ref):
    """One (tile_b, N_pad) row block -> per-element loss."""
    x = x_ref[...].astype(jnp.float32)
    y = y_ref[...].astype(jnp.float32)
    out_ref[...] = (-y * _log_softmax_f32(x)).astype(out_ref.dtype)


def _choose_tile_b(b, n_pad, in_itemsize, out_itemsize):
    """Largest row tile (multiple of the sublane pack) fitting the VMEM budget."""
    align = 16 if in_itemsize < 4 else 8           # bf16 packs 16 rows per vreg
    # Double-buffered pipeline: 2 buffers x (x + y inputs [+ output]) per row.
    bytes_per_row = 2 * (2 * in_itemsize + out_itemsize) * n_pad
    tile_b = _TILE_BYTES_BUDGET // max(bytes_per_row, 1)
    tile_b = (tile_b // align) * align
    tile_b = max(align, min(tile_b, _MAX_TILE_B, _round_up(b, align)))
    # TODO(synk): for vocab-scale N the minimum tile can still exceed v7x's
    # smaller VMEM; that needs a second (last, 'arbitrary') grid axis over N
    # with an online log-sum-exp carried in VMEM scratch.
    return tile_b


@functools.partial(jax.jit, static_argnames=("reduction",))
def multinomial_nll_loss(inputs, target, reduction="elementwise_mean"):
    """JAX/Pallas equivalent of MultinomialNLLLoss.forward."""
    assert inputs.shape == target.shape
    B, N = inputs.shape
    in_itemsize = jnp.dtype(inputs.dtype).itemsize

    n_pad = _round_up(N, 128)
    out_itemsize = 4 if reduction == "none" else 0
    tile_b = _choose_tile_b(B, n_pad, in_itemsize, out_itemsize)
    b_pad = _round_up(B, tile_b)
    num_blocks = b_pad // tile_b

    pad_b, pad_n = b_pad - B, n_pad - N
    if pad_b or pad_n:
        # Pad logits with a large-but-finite negative (adds ~0 to the softmax
        # denominator, no inf/NaN) and targets with 0 so every padded element
        # contributes exactly 0 loss.
        neg = float(jnp.finfo(inputs.dtype).min) / 2.0
        x = jnp.pad(inputs, ((0, pad_b), (0, pad_n)), constant_values=neg)
        y = jnp.pad(target, ((0, pad_b), (0, pad_n)), constant_values=0)
    else:
        x, y = inputs, target

    grid = (num_blocks,)
    in_specs = [
        pl.BlockSpec((tile_b, n_pad), lambda i: (i, 0)),
        pl.BlockSpec((tile_b, n_pad), lambda i: (i, 0)),
    ]
    compiler_params = pltpu.CompilerParams(
        dimension_semantics=("parallel",),
        vmem_limit_bytes=_VMEM_LIMIT_BYTES,
    )

    if reduction == "none":
        cost = pl.CostEstimate(
            flops=5 * b_pad * n_pad,
            transcendentals=b_pad * n_pad,
            bytes_accessed=(2 * in_itemsize + 4) * b_pad * n_pad,
        )
        out = pl.pallas_call(
            _mnll_elementwise_kernel,
            out_shape=jax.ShapeDtypeStruct((b_pad, n_pad), jnp.float32),
            grid=grid,
            in_specs=in_specs,
            out_specs=pl.BlockSpec((tile_b, n_pad), lambda i: (i, 0)),
            compiler_params=compiler_params,
            cost_estimate=cost,
        )(x, y)
        return out[:B, :N]

    if reduction not in ("sum", "elementwise_mean"):
        raise ValueError("No such reduction {} defined".format(reduction))

    # 'sum' / 'elementwise_mean': independent per-block partial sums (grid can
    # run fully parallel); the tiny final reduction happens in the wrapper.
    cost = pl.CostEstimate(
        flops=5 * b_pad * n_pad,
        transcendentals=b_pad * n_pad,
        bytes_accessed=2 * in_itemsize * b_pad * n_pad + num_blocks * 8 * 128 * 4,
    )
    partials = pl.pallas_call(
        _mnll_partial_sum_kernel,
        out_shape=jax.ShapeDtypeStruct((num_blocks, 8, 128), jnp.float32),
        grid=grid,
        in_specs=in_specs,
        out_specs=pl.BlockSpec((1, 8, 128), lambda i: (i, 0, 0)),
        compiler_params=compiler_params,
        cost_estimate=cost,
    )(x, y)

    total = jnp.sum(partials[:, 0, 0])
    if reduction == "sum":
        return total
    return total / jnp.float32(B * N)   # mean over the ORIGINAL element count


def _reference(inputs, target, reduction="elementwise_mean"):
    log_sm = jax.nn.log_softmax(inputs.astype(jnp.float32), axis=1)
    loss = -target.astype(jnp.float32) * log_sm
    if reduction == "none":
        return loss
    elif reduction == "sum":
        return jnp.sum(loss)
    return jnp.mean(loss)


if __name__ == "__main__":
    key = jax.random.PRNGKey(0)
    kx, ky, kx2, ky2 = jax.random.split(key, 4)

    # Small aligned shapes: batch x num_items (softmax over dim=1).
    B, N = 16, 256
    x = jax.random.normal(kx, (B, N), dtype=jnp.float32)
    y = jax.random.uniform(ky, (B, N), dtype=jnp.float32)  # multinomial-style counts

    out_mean = multinomial_nll_loss(x, y, reduction="elementwise_mean")
    jax.block_until_ready(out_mean)
    assert jnp.allclose(out_mean, _reference(x, y, "elementwise_mean"),
                        rtol=1e-5, atol=1e-5)

    out_sum = multinomial_nll_loss(x, y, reduction="sum")
    jax.block_until_ready(out_sum)
    assert jnp.allclose(out_sum, _reference(x, y, "sum"), rtol=1e-5, atol=1e-4)

    out_none = multinomial_nll_loss(x, y, reduction="none")
    jax.block_until_ready(out_none)
    assert jnp.allclose(out_none, _reference(x, y, "none"), rtol=1e-5, atol=1e-5)

    # Unaligned shapes exercise the row/lane padding path.
    B2, N2 = 13, 200
    x2 = jax.random.normal(kx2, (B2, N2), dtype=jnp.float32)
    y2 = jax.random.uniform(ky2, (B2, N2), dtype=jnp.float32)

    out2_mean = multinomial_nll_loss(x2, y2, reduction="elementwise_mean")
    jax.block_until_ready(out2_mean)
    assert jnp.allclose(out2_mean, _reference(x2, y2, "elementwise_mean"),
                        rtol=1e-5, atol=1e-5)

    out2_none = multinomial_nll_loss(x2, y2, reduction="none")
    jax.block_until_ready(out2_none)
    assert jnp.allclose(out2_none, _reference(x2, y2, "none"), rtol=1e-5, atol=1e-5)

    print("KERNEL_OK")
</pallas_src>

<mosaic_0001>
module attributes {stable_mosaic.version = 11 : i64} {
  func.func @_mnll_partial_sum_kernel(%arg0: i32, %arg1: memref<16x256xf32, #tpu.memory_space<vmem>>, %arg2: memref<16x256xf32, #tpu.memory_space<vmem>>, %arg3: memref<1x8x128xf32, #tpu.memory_space<vmem>>) attributes {dimension_semantics = [#tpu.dimension_semantics<parallel>], iteration_bounds = array<i64: 1>, scalar_prefetch = 0 : i64, scratch_operands = 0 : i64, tpu.core_type = #tpu.core_type<tc>, window_params = [{transform_indices = @transform_0, window_bounds = array<i64: 16, 256>}, {transform_indices = @transform_1, window_bounds = array<i64: 16, 256>}, {transform_indices = @transform_2, window_bounds = array<i64: 1, 8, 128>}]} {
    %c0 = arith.constant 0 : index
    %c0_0 = arith.constant 0 : index
    %0 = vector.load %arg1[%c0, %c0_0] : memref<16x256xf32, #tpu.memory_space<vmem>>, vector<16x256xf32>
    %c0_1 = arith.constant 0 : index
    %c0_2 = arith.constant 0 : index
    %1 = vector.load %arg2[%c0_1, %c0_2] : memref<16x256xf32, #tpu.memory_space<vmem>>, vector<16x256xf32>
    %cst = arith.constant dense<0xFF800000> : vector<16xf32>
    %2 = vector.multi_reduction <maximumf>, %0, %cst [1] : vector<16x256xf32> to vector<16xf32>
    %3 = vector.shape_cast %2 : vector<16xf32> to vector<16x1xf32>
    %4 = vector.broadcast %3 : vector<16x1xf32> to vector<16x256xf32>
    %5 = arith.subf %0, %4 : vector<16x256xf32>
    %6 = math.exp %5 : vector<16x256xf32>
    %cst_3 = arith.constant dense<0.000000e+00> : vector<16xf32>
    %7 = vector.multi_reduction <add>, %6, %cst_3 [1] : vector<16x256xf32> to vector<16xf32>
    %8 = vector.shape_cast %7 : vector<16xf32> to vector<16x1xf32>
    %9 = math.log %8 : vector<16x1xf32>
    %10 = vector.broadcast %9 : vector<16x1xf32> to vector<16x256xf32>
    %11 = arith.subf %5, %10 : vector<16x256xf32>
    %cst_4 = arith.constant 0.000000e+00 : f32
    %12 = vector.broadcast %cst_4 : f32 to vector<16x256xf32>
    %13 = arith.subf %12, %1 : vector<16x256xf32>
    %14 = arith.mulf %13, %11 : vector<16x256xf32>
    %15 = vector.shape_cast %14 : vector<16x256xf32> to vector<1x16x256xf32>
    %cst_5 = arith.constant dense<0.000000e+00> : vector<1xf32>
    %16 = vector.multi_reduction <add>, %15, %cst_5 [1, 2] : vector<1x16x256xf32> to vector<1xf32>
    %17 = vector.shape_cast %16 : vector<1xf32> to vector<1x1x1xf32>
    %18 = vector.extract %17[0, 0, 0] : f32 from vector<1x1x1xf32>
    %19 = vector.broadcast %18 : f32 to vector<1x8x128xf32>
    %c0_6 = arith.constant 0 : index
    %c0_7 = arith.constant 0 : index
    %c0_8 = arith.constant 0 : index
    %20 = vector.load %arg3[%c0_6, %c0_7, %c0_8] : memref<1x8x128xf32, #tpu.memory_space<vmem>>, vector<1x8x128xf32>
    tpu.vector_store %arg3[%c0_6, %c0_7, %c0_8], %19 {strides = array<i32>} : memref<1x8x128xf32, #tpu.memory_space<vmem>>, vector<1x8x128xf32>,
    return
  }
  func.func @transform_0(%arg0: i32) -> (i32, i32) {
    %c0_i32 = arith.constant 0 : i32
    %c0_i32_0 = arith.constant 0 : i32
    return %arg0, %c0_i32 : i32, i32
  }
  func.func @transform_1(%arg0: i32) -> (i32, i32) {
    %c0_i32 = arith.constant 0 : i32
    %c0_i32_0 = arith.constant 0 : i32
    return %arg0, %c0_i32 : i32, i32
  }
  func.func @transform_2(%arg0: i32) -> (i32, i32, i32) {
    %c0_i32 = arith.constant 0 : i32
    %c0_i32_0 = arith.constant 0 : i32
    %c0_i32_1 = arith.constant 0 : i32
    return %arg0, %c0_i32, %c0_i32_0 : i32, i32, i32
  }
}

</mosaic_0001>

<bundles_post_ra>
// kernel: multinomial_nll_loss.1
= control target key start
LH: loop header
LB: loop body
LE: loop exit
PB: predicated region body
PF: predicated region fallthrough
CT: control target
= control target key end

     0   :  { %7 = vsyncpa [#allocation3], 0  ;;  %s209_s0 = inlined_call_operand.hbm [shape: f32[16,256], index: 0, kind: input, shape index: {}]   ;;  %s210_s1 = inlined_call_operand.hbm [shape: f32[16,256], index: 1, kind: input, shape index: {}]   ;;  %s211_s2 = inlined_call_operand.vmem [shape: f32[1,8,128], index: 2, kind: output, shape index: {}]  }
   0x1   :  { %s13_s11 = sshll.u32 %s209_s0, 4  ;;  %s14_s11 = int_to_ptr.hbm [resolvable:$true] %s13_s11 }
   0x2   :  { %8 = vsyncpa [#allocation5], 0  ;;  %s181_s12 = smov [#allocation2]   ;;  %s26_s16 = sshll.u32 %s210_s1, 4  ;;  %s27_s16 = int_to_ptr.hbm [resolvable:$true] %s26_s16 }
   0x3   :  { %s15_s13 = sshll.u32 %s181_s12, 4  ;;  %s182_s17 = smov 256   ;;  %s16_s13 = int_to_ptr.vmem [resolvable:$true] %s15_s13 }
   0x4   :  { %s183_s18 = smov 16   ;;  %s184_s19 = smov [#allocation4]  }
   0x5   :  { %21 = dma.hbm_to_vmem [thread:$0]  %s14_s11, 512, %s16_s13, [#allocation3], %s182_s17, %s182_s17, %s183_s18  }
   0x6   :  { %s28_s20 = sshll.u32 %s184_s19, 4  ;;  %s29_s20 = int_to_ptr.vmem [resolvable:$true] %s28_s20 }
   0x7   :  { %34 = dma.hbm_to_vmem [thread:$0]  %s27_s16, 512, %s29_s20, [#allocation5], %s182_s17, %s182_s17, %s183_s18  }
   0x8   :  { %177 = dma.done.wait [#allocation3], 512  }
   0x9   :  { %178 = vsyncadd [#allocation3], 4294966784 }
   0xa   :  { %179 = dma.done.wait [#allocation5], 512  }
   0xb   :  { %180 = vsyncadd [#allocation5], 4294966784  ;;  %v43_v0 = vld [vmem:[#allocation2] sm:$0xff]  ;;  %v44_v1 = vld [vmem:[#allocation2 + $0x8] sm:$0xff] }
   0xc   :  { %v51_v2 = vmax.f32 %v43_v0, %v44_v1  ;;  %v45_v3 = vld [vmem:[#allocation2 + $0x10] sm:$0xff]  ;;  %v46_v4 = vld [vmem:[#allocation2 + $0x18] sm:$0xff]  ;;  %v47_v26 = vld [vmem:[#allocation4] sm:$0xff] }
   0xd   :  { %v54_v5 = vmax.f32 %v45_v3, %v46_v4  ;;  %v48_v27 = vld [vmem:[#allocation4 + $0x8] sm:$0xff]  ;;  %v83_v30 = vsub.f32 0.0, %v47_v26  ;;  %v49_v32 = vld [vmem:[#allocation4 + $0x10] sm:$0xff]  ;;  %v50_v34 = vld [vmem:[#allocation4 + $0x18] sm:$0xff] }
   0xe   :  { %52 = vmax.xlane.f32.xlu0 %v51_v2  ;;  %v84_v31 = vsub.f32 0.0, %v48_v27  ;;  %v85_v36 = vsub.f32 0.0, %v49_v32  ;;  %v86_v41 = vsub.f32 0.0, %v50_v34 }
  0x16   :  { %55 = vmax.xlane.f32.xlu0 %v54_v5 }
  0x81   :  { %v53_v6 = vpop.xlane.xlu0 %52 }
  0x82   :  { %v57_v7 = vsub.f32 %v43_v0, %v53_v6  ;;  %v58_v8 = vsub.f32 %v44_v1, %v53_v6 }
  0x84   :  { %v61_v9 = vmul.f32 1.442695, %v57_v7  ;;  %v63_v10 = vmul.f32 1.442695, %v58_v8 }
  0x86   :  { %117 = vpow2.f32 %v61_v9 }
  0x87   :  { %119 = vpow2.f32 %v63_v10 }
  0x89   :  { %v56_v11 = vpop.xlane.xlu0 %55 }
  0x8a   :  { %v59_v12 = vsub.f32 %v45_v3, %v56_v11  ;;  %v60_v13 = vsub.f32 %v46_v4, %v56_v11 }
  0x8c   :  { %v118_v14 = vpop.eup %117  ;;  %v65_v15 = vmul.f32 1.442695, %v59_v12  ;;  %v67_v16 = vmul.f32 1.442695, %v60_v13 }
  0x8d   :  { %v120_v17 = vpop.eup %119 }
  0x8e   :  { %121 = vpow2.f32 %v65_v15  ;;  %v69_v18 = vadd.f32 %v120_v17, %v118_v14 }
  0x8f   :  { %123 = vpow2.f32 %v67_v16 }
  0x90   :  { %70 = vadd.xlane.f32.xlu1 %v69_v18 }
  0x94   :  { %v122_v19 = vpop.eup %121 }
  0x95   :  { %v124_v20 = vpop.eup %123 }
  0x96   :  { %v72_v21 = vadd.f32 %v124_v20, %v122_v19 }
  0x98   :  { %73 = vadd.xlane.f32.xlu1 %v72_v21 }
 0x103   :  { %v71_v22 = vpop.xlane.xlu1 %70 }
 0x104   :  { %125 = vlog2.f32 %v71_v22 }
 0x10a   :  { %v126_v23 = vpop.eup %125 }
 0x10b   :  { %v76_v24 = vmul.f32 0.6931472, %v126_v23  ;;  %v74_v25 = vpop.xlane.xlu1 %73 }
 0x10c   :  { %127 = vlog2.f32 %v74_v25 }
 0x10d   :  { %v79_v28 = vsub.f32 %v57_v7, %v76_v24  ;;  %v80_v29 = vsub.f32 %v58_v8, %v76_v24 }
 0x10f   :  { %v87_v37 = vmul.f32 %v83_v30, %v79_v28  ;;  %v88_v38 = vmul.f32 %v84_v31, %v80_v29 }
 0x111   :  { %v91_v43 = vadd.f32 %v88_v38, %v87_v37 }
 0x112   :  { %v128_v33 = vpop.eup %127 }
 0x113   :  { %v78_v35 = vmul.f32 0.6931472, %v128_v33 }
 0x115   :  { %v81_v39 = vsub.f32 %v59_v12, %v78_v35  ;;  %v82_v40 = vsub.f32 %v60_v13, %v78_v35 }
 0x117   :  { %v89_v42 = vmul.f32 %v85_v36, %v81_v39  ;;  %v90_v44 = vmul.f32 %v86_v41, %v82_v40 }
 0x119   :  { %v92_v45 = vadd.f32 %v91_v43, %v89_v42 }
 0x11b   :  { %v93_v46 = vadd.f32 %v92_v45, %v90_v44 }
 0x11d   :  { %94 = vadd.xlane.f32.xlu2 %v93_v46 }
 0x190   :  { %v95_v47 = vpop.xlane.xlu2 %94 }
 0x191   :  { %v96_v48 = vrot.slane %v95_v47, 4 }
 0x193   :  { %v97_v49 = vadd.f32 %v96_v48, %v95_v47 }
 0x195   :  { %v98_v50 = vrot.slane %v97_v49, 2 }
 0x197   :  { %v99_v51 = vadd.f32 %v98_v50, %v97_v49 }
 0x199   :  { %v100_v52 = vrot.slane %v99_v51, 1 }
 0x19b   :  { %v101_v53 = vadd.f32 %v100_v52, %v99_v51 }
 0x19d   :  { %111 = vpush %v101_v53 }
 0x1ce   :  { %s112_s0 = spop %111 }
 0x1cf   :  { %v103_v54 = vstv %s112_s0 }
 0x1d0   :  { %104 = vst [vmem:[%s211_s2] sm:$0xff] %v103_v54 }
 0x1d1   :  { %109 = vsyncpa [#allocation3], 1 }
 0x1d2   :  { %110 = vsyncpa [#allocation5], 1 }

</bundles_post_ra>
